<compile_context>
chip_gen: v5e
topology: v5e:2x2
jax: 0.10.0
libtpu: 0.0.40
codegen_flags: <defaults>
</compile_context>

<pallas_src>
import functools

import jax
import jax.numpy as jnp
from jax import lax
from jax.experimental import pallas as pl
from jax.experimental.pallas import tpu as pltpu


def _critic_mlp_kernel(x_ref, w1_ref, b1_ref, w2_ref, b2_ref, w3_ref, b3_ref,
                       o_ref, *, use_relu: bool):
    """One batch tile of fc1 -> act -> fc2 -> act -> fc3.

    x_ref : (TB, D) native-layout batch tile
    w*_ref: PyTorch (out, in) weight layout; W1/W2 in the matmul compute dtype
    b1/b2 : (H, 1) f32 columns; b3_ref: (1,) f32 scalar in SMEM
    o_ref : (1, TB) lane-dense value row
    """
    act = (lambda v: jnp.maximum(v, 0.0)) if use_relu else jnp.tanh
    cdt = w1_ref.dtype                       # matmul compute dtype (bf16 or f32)

    x = x_ref[...].astype(cdt)               # (TB, D)

    # fc1: contract D of W1 (H, D) against D of x (TB, D) -> (H, TB).
    # Batch lands on the lane axis with no explicit transpose (MXU handles the
    # transposed operand natively).
    h1 = lax.dot_general(w1_ref[...], x,
                         dimension_numbers=(((1,), (1,)), ((), ())),
                         preferred_element_type=jnp.float32)
    h1 = act(h1 + b1_ref[...])                                   # (H, TB) f32

    # fc2: (H, H) @ (H, TB) -> (H, TB)
    h2 = jnp.dot(w2_ref[...], h1.astype(cdt),
                 preferred_element_type=jnp.float32)
    h2 = act(h2 + b2_ref[...])                                   # (H, TB) f32

    # fc3 (H -> 1): lane-wise multiply + cross-sublane reduction (VPU + XLU);
    # result is already lane-dense (1, TB).  b3 is a scalar read from SMEM.
    v = jnp.sum(h2 * w3_ref[...], axis=0, keepdims=True) + b3_ref[0]
    o_ref[...] = v.astype(o_ref.dtype)


def critic_mlp_forward(x, w1, b1, w2, b2, w3, b3, *, use_relu=False,
                       tile_b=None, matmul_dtype=jnp.bfloat16):
    """
    x : (B, D) float32
    w1: (H, D), b1: (H, 1)   -- PyTorch (out, in) weight layout
    w2: (H, H), b2: (H, 1)
    w3: (H, 1), b3: (1,)
    returns value of shape (B, 1) float32
    """
    B, D = x.shape
    H = w1.shape[0]

    # Batch-tile policy:
    #  * B <= 512: one grid step (no per-step pipeline overhead).
    #  * B  > 512: 128-aligned tiles, capped at 2048 lanes, and at least 2 grid
    #    steps so the "parallel" axis can shard across both v7x TensorCores.
    if tile_b is None:
        if B <= 512:
            tile_b = B
        else:
            half = -(-((B + 1) // 2) // 128) * 128       # ceil(B/2) -> 128-aligned
            tile_b = min(2048, half)
    else:
        if tile_b >= B:
            tile_b = B                                    # single step, full block
        else:
            tile_b = -(-tile_b // 128) * 128              # lane-aligned when nb > 1

    nb = pl.cdiv(B, tile_b)

    # Matmul operands in bf16 (MXU fast path on v5e/v6e/v7x); biases, the fc3
    # reduction weights and all accumulation / activations stay f32.
    w1c = w1.astype(matmul_dtype)
    w2c = w2.astype(matmul_dtype)

    kernel = functools.partial(_critic_mlp_kernel, use_relu=use_relu)

    # TODO(synk): if hidden_dim ever grows so a resident W2 approaches v7x's
    # 64 MiB/TC VMEM, add a reduction grid axis over W2 instead of keeping the
    # full (H, H) block resident.
    out = pl.pallas_call(
        kernel,
        out_shape=jax.ShapeDtypeStruct((1, B), jnp.float32),
        grid=(nb,),
        in_specs=[
            pl.BlockSpec((tile_b, D), lambda i: (i, 0)),        # x, native layout
            pl.BlockSpec((H, D), lambda i: (0, 0)),             # W1 (resident)
            pl.BlockSpec((H, 1), lambda i: (0, 0)),             # b1
            pl.BlockSpec((H, H), lambda i: (0, 0)),             # W2 (resident)
            pl.BlockSpec((H, 1), lambda i: (0, 0)),             # b2
            pl.BlockSpec((H, 1), lambda i: (0, 0)),             # w3
            pl.BlockSpec(memory_space=pltpu.MemorySpace.SMEM),  # b3 scalar in SMEM
        ],
        out_specs=pl.BlockSpec((1, tile_b), lambda i: (0, i)),  # lane-dense output
        compiler_params=pltpu.CompilerParams(
            dimension_semantics=("parallel",)),
    )(x, w1c, b1, w2c, b2, w3, b3)

    # (1, B) lane-dense row -> (B, 1) column (order-preserving reshape).
    return out.reshape(B, 1)


def make_params(key, critic_input_dim, hidden_dim, use_orthogonal_init=True):
    """Parameters in the kernel's layout: weights (out, in) like PyTorch,
    biases as (out, 1) columns, b3 as a (1,) scalar array."""
    D, H = critic_input_dim, hidden_dim
    kw1, kw2, kw3, kb1, kb2, kb3 = jax.random.split(key, 6)
    if use_orthogonal_init:
        init = jax.nn.initializers.orthogonal(scale=1.0)
        w1 = init(kw1, (H, D), jnp.float32)
        w2 = init(kw2, (H, H), jnp.float32)
        w3 = init(kw3, (1, H), jnp.float32).T          # (H, 1)
        b1 = jnp.zeros((H, 1), jnp.float32)            # orthogonal_init zeroes biases
        b2 = jnp.zeros((H, 1), jnp.float32)
        b3 = jnp.zeros((1,), jnp.float32)
    else:
        # PyTorch default nn.Linear init: U(-1/sqrt(fan_in), 1/sqrt(fan_in))
        # for BOTH weights and biases.
        def unif(k, shape, fan_in):
            bound = 1.0 / (fan_in ** 0.5)
            return jax.random.uniform(k, shape, jnp.float32, -bound, bound)
        w1 = unif(kw1, (H, D), D)
        w2 = unif(kw2, (H, H), H)
        w3 = unif(kw3, (H, 1), H)
        b1 = unif(kb1, (H, 1), D)
        b2 = unif(kb2, (H, 1), H)
        b3 = unif(kb3, (1,), H)
    return w1, b1, w2, b2, w3, b3


def reference_forward(x, w1, b1, w2, b2, w3, b3, *, use_relu=False,
                      matmul_dtype=jnp.float32):
    """Pure-JAX reference; matmul_dtype mirrors the kernel's precision choice."""
    act = jax.nn.relu if use_relu else jnp.tanh
    md = matmul_dtype
    h1 = act(jnp.dot(x.astype(md), w1.astype(md).T,
                     preferred_element_type=jnp.float32) + b1[:, 0])
    h2 = act(jnp.dot(h1.astype(md), w2.astype(md).T,
                     preferred_element_type=jnp.float32) + b2[:, 0])
    return h2 @ w3 + b3


if __name__ == "__main__":
    # Small shapes consistent with the module: batch=16, critic_input_dim=32,
    # mlp_hidden_dim=64, use_relu=False (Tanh), use_orthogonal_init=True.
    B, D, H = 16, 32, 64
    use_relu = False

    key = jax.random.PRNGKey(0)
    kx, kp = jax.random.split(key)
    x = jax.random.normal(kx, (B, D), jnp.float32)
    params = make_params(kp, D, H, use_orthogonal_init=True)

    value = critic_mlp_forward(x, *params, use_relu=use_relu)
    value = jax.block_until_ready(value)
    assert value.shape == (B, 1)

    # Reference matched to the kernel's precision (bf16 matmul operands, f32 acc).
    ref_bf16 = reference_forward(x, *params, use_relu=use_relu,
                                 matmul_dtype=jnp.bfloat16)
    assert jnp.allclose(value, ref_bf16, atol=1e-3, rtol=1e-3), \
        "mismatch vs bf16-matched reference"

    # Sanity against the pure-f32 reference (relaxed tolerance: expected bf16 drift).
    ref_f32 = reference_forward(x, *params, use_relu=use_relu,
                                matmul_dtype=jnp.float32)
    assert jnp.allclose(value, ref_f32, atol=5e-2, rtol=5e-2), \
        "mismatch vs f32 reference"

    # Exercise the tiled path: >= 2 grid steps (v7x megacore) + a partial last
    # block (B2 = 800 -> tile_b = 512, blocks of 512 and 288 real lanes).
    B2 = 800
    x2 = jax.random.normal(jax.random.PRNGKey(1), (B2, D), jnp.float32)
    v2 = jax.block_until_ready(critic_mlp_forward(x2, *params, use_relu=use_relu))
    r2 = reference_forward(x2, *params, use_relu=use_relu,
                           matmul_dtype=jnp.bfloat16)
    assert v2.shape == (B2, 1)
    assert jnp.allclose(v2, r2, atol=1e-3, rtol=1e-3), \
        "mismatch vs reference on tiled path"

    print("KERNEL_OK")
</pallas_src>

<mosaic_0001>
module attributes {stable_mosaic.version = 11 : i64} {
  func.func @_critic_mlp_kernel(%arg0: i32, %arg1: memref<16x32xf32, #tpu.memory_space<vmem>>, %arg2: memref<64x32xbf16, #tpu.memory_space<vmem>>, %arg3: memref<64x1xf32, #tpu.memory_space<vmem>>, %arg4: memref<64x64xbf16, #tpu.memory_space<vmem>>, %arg5: memref<64x1xf32, #tpu.memory_space<vmem>>, %arg6: memref<64x1xf32, #tpu.memory_space<vmem>>, %arg7: memref<1xf32, #tpu.memory_space<smem>>, %arg8: memref<1x16xf32, #tpu.memory_space<vmem>>) attributes {dimension_semantics = [#tpu.dimension_semantics<parallel>], iteration_bounds = array<i64: 1>, scalar_prefetch = 0 : i64, scratch_operands = 0 : i64, tpu.core_type = #tpu.core_type<tc>, window_params = [{transform_indices = @transform_0, window_bounds = array<i64: 16, 32>}, {pipeline_mode = #tpu.pipeline_mode<synchronous>, transform_indices = @transform_1, window_bounds = array<i64: 64, 32>}, {pipeline_mode = #tpu.pipeline_mode<synchronous>, transform_indices = @transform_2, window_bounds = array<i64: 64, 1>}, {pipeline_mode = #tpu.pipeline_mode<synchronous>, transform_indices = @transform_3, window_bounds = array<i64: 64, 64>}, {pipeline_mode = #tpu.pipeline_mode<synchronous>, transform_indices = @transform_4, window_bounds = array<i64: 64, 1>}, {pipeline_mode = #tpu.pipeline_mode<synchronous>, transform_indices = @transform_5, window_bounds = array<i64: 64, 1>}, {transform_indices = @transform_6, window_bounds = array<i64: 1>}, {transform_indices = @transform_7, window_bounds = array<i64: 1, 16>}]} {
    %c0 = arith.constant 0 : index
    %c0_0 = arith.constant 0 : index
    %0 = vector.load %arg1[%c0, %c0_0] : memref<16x32xf32, #tpu.memory_space<vmem>>, vector<16x32xf32>
    %1 = arith.truncf %0 : vector<16x32xf32> to vector<16x32xbf16>
    %c0_1 = arith.constant 0 : index
    %c0_2 = arith.constant 0 : index
    %2 = vector.load %arg2[%c0_1, %c0_2] : memref<64x32xbf16, #tpu.memory_space<vmem>>, vector<64x32xbf16>
    %cst = arith.constant dense<0.000000e+00> : vector<64x16xf32>
    %3 = tpu.matmul %2, %1, %cst {dimension_numbers = #tpu.dot_dimension_numbers<[1], [1], [0], [0], [0, 0, 1, 0], [], []>} : vector<64x32xbf16>, vector<16x32xbf16>, vector<64x16xf32> -> vector<64x16xf32>
    %c0_3 = arith.constant 0 : index
    %c0_4 = arith.constant 0 : index
    %4 = vector.load %arg3[%c0_3, %c0_4] : memref<64x1xf32, #tpu.memory_space<vmem>>, vector<64x1xf32>
    %5 = vector.broadcast %4 : vector<64x1xf32> to vector<64x16xf32>
    %6 = arith.addf %3, %5 : vector<64x16xf32>
    %7 = math.tanh %6 : vector<64x16xf32>
    %c0_5 = arith.constant 0 : index
    %c0_6 = arith.constant 0 : index
    %8 = vector.load %arg4[%c0_5, %c0_6] : memref<64x64xbf16, #tpu.memory_space<vmem>>, vector<64x64xbf16>
    %9 = arith.truncf %7 : vector<64x16xf32> to vector<64x16xbf16>
    %cst_7 = arith.constant dense<0.000000e+00> : vector<64x16xf32>
    %10 = tpu.matmul %8, %9, %cst_7 {dimension_numbers = #tpu.dot_dimension_numbers<[1], [0], [0], [1], [0, 0, 1, 1], [], []>} : vector<64x64xbf16>, vector<64x16xbf16>, vector<64x16xf32> -> vector<64x16xf32>
    %c0_8 = arith.constant 0 : index
    %c0_9 = arith.constant 0 : index
    %11 = vector.load %arg5[%c0_8, %c0_9] : memref<64x1xf32, #tpu.memory_space<vmem>>, vector<64x1xf32>
    %12 = vector.broadcast %11 : vector<64x1xf32> to vector<64x16xf32>
    %13 = arith.addf %10, %12 : vector<64x16xf32>
    %14 = math.tanh %13 : vector<64x16xf32>
    %c0_10 = arith.constant 0 : index
    %c0_11 = arith.constant 0 : index
    %15 = vector.load %arg6[%c0_10, %c0_11] : memref<64x1xf32, #tpu.memory_space<vmem>>, vector<64x1xf32>
    %16 = vector.broadcast %15 : vector<64x1xf32> to vector<64x16xf32>
    %17 = arith.mulf %14, %16 : vector<64x16xf32>
    %cst_12 = arith.constant dense<0.000000e+00> : vector<16xf32>
    %18 = vector.multi_reduction <add>, %17, %cst_12 [0] : vector<64x16xf32> to vector<16xf32>
    %19 = vector.shape_cast %18 : vector<16xf32> to vector<1x16xf32>
    %c0_13 = arith.constant 0 : index
    %20 = memref.load %arg7[%c0_13] : memref<1xf32, #tpu.memory_space<smem>>
    %21 = vector.broadcast %20 : f32 to vector<1x16xf32>
    %22 = arith.addf %19, %21 : vector<1x16xf32>
    %c0_14 = arith.constant 0 : index
    %c0_15 = arith.constant 0 : index
    %23 = vector.load %arg8[%c0_14, %c0_15] : memref<1x16xf32, #tpu.memory_space<vmem>>, vector<1x16xf32>
    tpu.vector_store %arg8[%c0_14, %c0_15], %22 {strides = array<i32>} : memref<1x16xf32, #tpu.memory_space<vmem>>, vector<1x16xf32>,
    return
  }
  func.func @transform_0(%arg0: i32) -> (i32, i32) {
    %c0_i32 = arith.constant 0 : i32
    %c0_i32_0 = arith.constant 0 : i32
    return %arg0, %c0_i32 : i32, i32
  }
  func.func @transform_1(%arg0: i32) -> (i32, i32) {
    %c0_i32 = arith.constant 0 : i32
    %c0_i32_0 = arith.constant 0 : i32
    %c0_i32_1 = arith.constant 0 : i32
    return %c0_i32, %c0_i32_0 : i32, i32
  }
  func.func @transform_2(%arg0: i32) -> (i32, i32) {
    %c0_i32 = arith.constant 0 : i32
    %c0_i32_0 = arith.constant 0 : i32
    %c0_i32_1 = arith.constant 0 : i32
    return %c0_i32, %c0_i32_0 : i32, i32
  }
  func.func @transform_3(%arg0: i32) -> (i32, i32) {
    %c0_i32 = arith.constant 0 : i32
    %c0_i32_0 = arith.constant 0 : i32
    %c0_i32_1 = arith.constant 0 : i32
    return %c0_i32, %c0_i32_0 : i32, i32
  }
  func.func @transform_4(%arg0: i32) -> (i32, i32) {
    %c0_i32 = arith.constant 0 : i32
    %c0_i32_0 = arith.constant 0 : i32
    %c0_i32_1 = arith.constant 0 : i32
    return %c0_i32, %c0_i32_0 : i32, i32
  }
  func.func @transform_5(%arg0: i32) -> (i32, i32) {
    %c0_i32 = arith.constant 0 : i32
    %c0_i32_0 = arith.constant 0 : i32
    %c0_i32_1 = arith.constant 0 : i32
    return %c0_i32, %c0_i32_0 : i32, i32
  }
  func.func @transform_6(%arg0: i32) -> i32 {
    %c0_i32 = arith.constant 0 : i32
    %c0_i32_0 = arith.constant 0 : i32
    return %c0_i32 : i32
  }
  func.func @transform_7(%arg0: i32) -> (i32, i32) {
    %c0_i32 = arith.constant 0 : i32
    %c0_i32_0 = arith.constant 0 : i32
    return %c0_i32, %arg0 : i32, i32
  }
}

</mosaic_0001>

<bundles_post_ra>
// kernel: tpu_custom_call.1
= control target key start
LH: loop header
LB: loop body
LE: loop exit
PB: predicated region body
PF: predicated region fallthrough
CT: control target
= control target key end

     0   :  { %vm108_vm0 = vcmask 261120   ;;  %v506_v3 = vmov 0   ;;  %s669_s0 = inlined_call_operand.vmem [shape: f32[16,32], index: 0, kind: input, shape index: {}]   ;;  %s670_s1 = inlined_call_operand.vmem [shape: bf16[64,32], index: 1, kind: input, shape index: {}]   ;;  %s671_s2 = inlined_call_operand.vmem [shape: f32[64,1], index: 2, kind: input, shape index: {}]   ;;  %s672_s3 = inlined_call_operand.vmem [shape: bf16[64,64], index: 3, kind: input, shape index: {}]   ;;  %s673_s4 = inlined_call_operand.vmem [shape: f32[64,1], index: 4, kind: input, shape index: {}]   ;;  %s674_s5 = inlined_call_operand.vmem [shape: f32[64,1], index: 5, kind: input, shape index: {}]   ;;  %s675_s6 = inlined_call_operand.<no memory space> [shape: f32[1], index: 6, kind: input, shape index: {}]   ;;  %s676_s7 = inlined_call_operand.hbm [shape: f32[1,16], index: 7, kind: output, shape index: {}]  }
   0x1   :  { %v46_v0 = vld [vmem:[%s671_s2 + $0x30] sm:$0xff]  ;;  %v29_v1 = vld [vmem:[%s669_s0] sm:$0xff]  ;;  %v30_v2 = vld [vmem:[%s669_s0 + $0x8] sm:$0xff]  ;;  %445 = vset.pattern.permute.xlu0 %v506_v3  ;;  %446 = vset.pattern.permute.xlu1 %v506_v3 }
   0x2   :  { %v31_v4 = vpack.c.bf16 %v30_v2, %v29_v1  ;;  %v44_v5 = vld [vmem:[%s671_s2 + $0x20] sm:$0xff]  ;;  %80 = vperm.xlu0 %445, %v46_v0   ;;  %447 = vset.pattern.permute.xlu2 %v506_v3  ;;  %v42_v7 = vld [vmem:[%s671_s2 + $0x10] sm:$0xff] }
   0x3   :  { %70 = vperm.xlu1 %446, %v44_v5   ;;  %60 = vperm.xlu2 %447, %v42_v7  }
   0x4   :  { %v122_v6 = vsel %vm108_vm0, %v31_v4, 0 }
   0x5   :  { %438 = vmatpush.bf16.xpose.msra.mxu3 %v122_v6  ;;  %131 = vmatpush.bf16.xpose.msra.mxu0 %v122_v6 }
   0x6   :  { %13 = vsyncpa [#allocation4], 0  ;;  %v431_v8 = vld [vmem:[%s670_s1 + $0x8] sm:$0xff]  ;;  %v47_v9 = vld [vmem:[%s671_s2 + $0x38] sm:$0xff]  ;;  %vm241_vm1 = vcmask 523264   ;;  %vm347_vm2 = vcmask 130048  }
   0x7   :  { %v45_v10 = vld [vmem:[%s671_s2 + $0x28] sm:$0xff]  ;;  %v430_v11 = vld [vmem:[%s670_s1] sm:$0xff]  ;;  %v43_v12 = vld [vmem:[%s671_s2 + $0x18] sm:$0xff]  ;;  %s507_s16 = smov [#allocation3]   ;;  %s381_s20 = sshll.u32 %s676_s7, 4  ;;  %vm372_vm3 = vcmask 122880   ;;  %s382_s20 = int_to_ptr.hbm [resolvable:$true] %s381_s20 }
   0x8   :  { %v40_v13 = vld [vmem:[%s671_s2] sm:$0xff]  ;;  %v41_v14 = vld [vmem:[%s671_s2 + $0x8] sm:$0xff]  ;;  %v432_v16 = vld [vmem:[%s670_s1 + $0x10] sm:$0xff]  ;;  %s379_s17 = sshll.u32 %s507_s16, 4  ;;  %s380_s17 = int_to_ptr.vmem [resolvable:$true] %s379_s17 }
   0x9   :  { %v173_v15 = vld [vmem:[%s673_s4] sm:$0xff]  ;;  %v174_v17 = vld [vmem:[%s673_s4 + $0x8] sm:$0xff]  ;;  %v175_v18 = vld [vmem:[%s673_s4 + $0x10] sm:$0xff] }
   0xa   :  { %85 = vperm.xlu0 %445, %v47_v9   ;;  %v176_v19 = vld [vmem:[%s673_s4 + $0x18] sm:$0xff]  ;;  %v177_v20 = vld [vmem:[%s673_s4 + $0x20] sm:$0xff]  ;;  %v178_v21 = vld [vmem:[%s673_s4 + $0x28] sm:$0xff] }
   0xb   :  { %75 = vperm.xlu1 %446, %v45_v10   ;;  %65 = vperm.xlu2 %447, %v43_v12   ;;  %v291_v22 = vld [vmem:[%s674_s5] sm:$0xff]  ;;  %v433_v23 = vld [vmem:[%s670_s1 + $0x18] sm:$0xff]  ;;  %v292_v24 = vld [vmem:[%s674_s5 + $0x8] sm:$0xff] }
   0xc   :  { %407 = vmatmul.msk.bf16.vlgmr.msra.gmra.mxu3 %vm108_vm0, %v431_v8  ;;  %406 = vmatmul.msk.bf16.vlgmr.msra.gmra.mxu0 %vm108_vm0, %v430_v11  ;;  %v179_v25 = vld [vmem:[%s673_s4 + $0x30] sm:$0xff]  ;;  %v180_v27 = vld [vmem:[%s673_s4 + $0x38] sm:$0xff]  ;;  %v295_v29 = vld [vmem:[%s674_s5 + $0x20] sm:$0xff] }
   0xd   :  { %v293_v26 = vld [vmem:[%s674_s5 + $0x10] sm:$0xff]  ;;  %v294_v28 = vld [vmem:[%s674_s5 + $0x18] sm:$0xff]  ;;  %v296_v30 = vld [vmem:[%s674_s5 + $0x28] sm:$0xff] }
   0xe   :  { %v297_v31 = vld [vmem:[%s674_s5 + $0x30] sm:$0xff]  ;;  %v298_v32 = vld [vmem:[%s674_s5 + $0x38] sm:$0xff]  ;;  %v434_v5 = vld [vmem:[%s672_s3] sm:$0xff] }
   0xf   :  { %v436_v6 = vld [vmem:[%s672_s3 + $0x10] sm:$0xff]  ;;  %v435_v7 = vld [vmem:[%s672_s3 + $0x8] sm:$0xff]  ;;  %v437_v8 = vld [vmem:[%s672_s3 + $0x18] sm:$0xff] }
  0x12   :  { %50 = vperm.xlu0 %445, %v40_v13  }
  0x13   :  { %55 = vperm.xlu1 %446, %v41_v14   ;;  %183 = vperm.xlu2 %447, %v173_v15  }
  0x1a   :  { %188 = vperm.xlu0 %445, %v174_v17  }
  0x1b   :  { %193 = vperm.xlu1 %446, %v175_v18   ;;  %198 = vperm.xlu2 %447, %v176_v19  }
  0x1c   :  { %408 = vmatmul.msk.bf16.gmra.mxu3 %vm108_vm0, %v432_v16 }
  0x22   :  { %203 = vperm.xlu0 %445, %v177_v20  }
  0x23   :  { %208 = vperm.xlu1 %446, %v178_v21   ;;  %301 = vperm.xlu2 %447, %v291_v22  }
  0x2a   :  { %306 = vperm.xlu0 %445, %v292_v24  }
  0x2b   :  { %213 = vperm.xlu1 %446, %v179_v25   ;;  %311 = vperm.xlu2 %447, %v293_v26  }
  0x2c   :  { %409 = vmatmul.msk.bf16.gmra.mxu3 %vm108_vm0, %v433_v23 }
  0x32   :  { %218 = vperm.xlu0 %445, %v180_v27  }
  0x33   :  { %316 = vperm.xlu1 %446, %v294_v28   ;;  %321 = vperm.xlu2 %447, %v295_v29  }
  0x3a   :  { %326 = vperm.xlu0 %445, %v296_v30  }
  0x3b   :  { %331 = vperm.xlu1 %446, %v297_v31   ;;  %336 = vperm.xlu2 %447, %v298_v32  }
  0x5d   :  { %v61_v40 = vpop.permute.xlu2 %60 }
  0x65   :  { %v66_v49 = vpop.permute.xlu2 %65 }
  0x6d   :  { %v184_v9 = vpop.permute.xlu2 %183 }
  0x74   :  { %v81_v37 = vpop.permute.xlu0 %80 }
  0x75   :  { %v71_v38 = vpop.permute.xlu1 %70  ;;  %v199_v12 = vpop.permute.xlu2 %198 }
  0x7c   :  { %v86_v42 = vpop.permute.xlu0 %85 }
  0x7d   :  { %v76_v43 = vpop.permute.xlu1 %75  ;;  %v302_v18 = vpop.permute.xlu2 %301 }
  0x84   :  { %v51_v52 = vpop.permute.xlu0 %50 }
  0x85   :  { %v56_v55 = vpop.permute.xlu1 %55  ;;  %v312_v26 = vpop.permute.xlu2 %311 }
  0x89   :  { %v133_v41 = vpop.f32.mrf.mxu0 }
  0x8a   :  { %v134_v56 = vadd.f32 %v133_v41, %v51_v52 }
  0x8c   :  { %v189_v10 = vpop.permute.xlu0 %188 }
  0x8d   :  { %v194_v11 = vpop.permute.xlu1 %193  ;;  %v322_v41 = vpop.permute.xlu2 %321 }
  0x8f   :  { %v138_v33 = vpop.f32.mrf.mxu3 }
  0x90   :  { %v139_v53 = vadd.f32 %v138_v33, %v61_v40 }
  0x91   :  { %v135_v51 = vpop.f32.mrf.mxu0 }
  0x92   :  { %v136_v58 = vadd.f32 %v135_v51, %v56_v55 }
  0x94   :  { %v204_v14 = vpop.permute.xlu0 %203 }
  0x95   :  { %v209_v16 = vpop.permute.xlu1 %208 }
  0x97   :  { %v140_v34 = vpop.f32.mrf.mxu3 }
  0x98   :  { %v141_v50 = vadd.f32 %v140_v34, %v66_v49 }
  0x9c   :  { %v307_v22 = vpop.permute.xlu0 %306 }
  0x9d   :  { %v214_v24 = vpop.permute.xlu1 %213 }
  0x9f   :  { %v143_v35 = vpop.f32.mrf.mxu3 }
  0xa0   :  { %v144_v48 = vadd.f32 %v143_v35, %v71_v38 }
  0xa4   :  { %v219_v34 = vpop.permute.xlu0 %218 }
  0xa5   :  { %v317_v38 = vpop.permute.xlu1 %316 }
  0xa7   :  { %v145_v36 = vpop.f32.mrf.mxu3 }
  0xa8   :  { %v146_v46 = vadd.f32 %v145_v36, %v76_v43 }
  0xaf   :  { %v148_v39 = vpop.f32.mrf.mxu3 }
  0xb0   :  { %v149_v44 = vadd.f32 %v148_v39, %v81_v37 }
  0xb2   :  { %448 = vtanh.f32 %v149_v44 }
  0xb7   :  { %v150_v45 = vpop.f32.mrf.mxu3 }
  0xb8   :  { %v151_v47 = vadd.f32 %v150_v45, %v86_v42  ;;  %v449_v54 = vpop.eup %448 }
  0xba   :  { %450 = vtanh.f32 %v151_v47 }
  0xbb   :  { %452 = vtanh.f32 %v146_v46 }
  0xbc   :  { %454 = vtanh.f32 %v144_v48 }
  0xbd   :  { %456 = vtanh.f32 %v141_v50 }
  0xbe   :  { %458 = vtanh.f32 %v139_v53 }
  0xbf   :  { %460 = vtanh.f32 %v134_v56 }
  0xc0   :  { %v451_v57 = vpop.eup %450  ;;  %462 = vtanh.f32 %v136_v58  ;;  %v332_v58 = vpop.permute.xlu1 %331 }
  0xc1   :  { %v172_v59 = vpack.c.bf16 %v451_v57, %v449_v54  ;;  %v453_v60 = vpop.eup %452  ;;  %v327_v54 = vpop.permute.xlu0 %326 }
  0xc2   :  { %v455_v61 = vpop.eup %454 }
  0xc3   :  { %258 = vmatpush.bf16.msra.mxu1 %v172_v59  ;;  %439 = vmatpush.bf16.msra.mxu2 %v172_v59  ;;  %v171_v62 = vpack.c.bf16 %v453_v60, %v455_v61  ;;  %v457_v63 = vpop.eup %456 }
  0xc4   :  { %v459_v0 = vpop.eup %458 }
  0xc5   :  { %v461_v1 = vpop.eup %460  ;;  %v170_v2 = vpack.c.bf16 %v457_v63, %v459_v0  ;;  %v337_v63 = vpop.permute.xlu2 %336 }
  0xc6   :  { %v463_v3 = vpop.eup %462 }
  0xc7   :  { %259 = vmatpush.bf16.msra.mxu1 %v171_v62  ;;  %440 = vmatpush.bf16.msra.mxu2 %v171_v62  ;;  %v169_v4 = vpack.c.bf16 %v463_v3, %v461_v1 }
  0xcb   :  { %260 = vmatpush.bf16.msra.mxu1 %v170_v2  ;;  %441 = vmatpush.bf16.msra.mxu2 %v170_v2 }
  0xcf   :  { %261 = vmatpush.bf16.msra.mxu1 %v169_v4  ;;  %442 = vmatpush.bf16.msra.mxu2 %v169_v4 }
  0xd2   :  { %426 = vmatmul.msk.bf16.vlgmr.msra.gmra.mxu1 %vm241_vm1, %v434_v5  ;;  %428 = vmatmul.msk.bf16.vlgmr.msra.gmra.mxu2 %vm241_vm1, %v436_v6 }
  0xe2   :  { %427 = vmatmul.msk.bf16.gmra.mxu1 %vm241_vm1, %v435_v7  ;;  %429 = vmatmul.msk.bf16.gmra.mxu2 %vm241_vm1, %v437_v8 }
 0x14f   :  { %v263_v13 = vpop.f32.mrf.mxu1 }
 0x150   :  { %v264_v20 = vadd.f32 %v263_v13, %v184_v9  ;;  %v370_v13 = vstv %s675_s6 }
 0x155   :  { %v273_v15 = vpop.f32.mrf.mxu2 }
 0x156   :  { %v274_v27 = vadd.f32 %v273_v15, %v204_v14 }
 0x157   :  { %v265_v17 = vpop.f32.mrf.mxu1 }
 0x158   :  { %v266_v19 = vadd.f32 %v265_v17, %v189_v10 }
 0x15a   :  { %464 = vtanh.f32 %v266_v19 }
 0x15b   :  { %466 = vtanh.f32 %v264_v20 }
 0x15d   :  { %v275_v21 = vpop.f32.mrf.mxu2 }
 0x15e   :  { %v276_v28 = vadd.f32 %v275_v21, %v209_v16 }
 0x15f   :  { %v268_v23 = vpop.f32.mrf.mxu1 }
 0x160   :  { %v269_v25 = vadd.f32 %v268_v23, %v194_v11  ;;  %v465_v30 = vpop.eup %464 }
 0x161   :  { %v467_v31 = vpop.eup %466  ;;  %v340_v37 = vmul.f32 %v465_v30, %v307_v22 }
 0x162   :  { %468 = vtanh.f32 %v269_v25  ;;  %v339_v39 = vmul.f32 %v467_v31, %v302_v18 }
 0x163   :  { %470 = vtanh.f32 %v274_v27  ;;  %v349_v42 = vsel %vm347_vm2, %v340_v37, 0.0 }
 0x164   :  { %472 = vtanh.f32 %v276_v28  ;;  %v348_v47 = vsel %vm347_vm2, %v339_v39, 0.0 }
 0x165   :  { %v278_v29 = vpop.f32.mrf.mxu2  ;;  %v350_v50 = vadd.f32 %v349_v42, %v348_v47 }
 0x166   :  { %v279_v35 = vadd.f32 %v278_v29, %v214_v24 }
 0x167   :  { %v270_v32 = vpop.f32.mrf.mxu1 }
 0x168   :  { %v469_v33 = vpop.eup %468  ;;  %v271_v36 = vadd.f32 %v270_v32, %v199_v12 }
 0x169   :  { %v341_v40 = vmul.f32 %v469_v33, %v312_v26  ;;  %v471_v44 = vpop.eup %470 }
 0x16a   :  { %474 = vtanh.f32 %v271_v36  ;;  %v473_v46 = vpop.eup %472  ;;  %v343_v51 = vmul.f32 %v471_v44, %v322_v41 }
 0x16b   :  { %476 = vtanh.f32 %v279_v35  ;;  %v351_v48 = vsel %vm347_vm2, %v341_v40, 0.0  ;;  %v344_v56 = vmul.f32 %v473_v46, %v327_v54 }
 0x16c   :  { %v352_v55 = vadd.f32 %v351_v48, %v350_v50  ;;  %v355_v60 = vsel %vm347_vm2, %v343_v51, 0.0 }
 0x16d   :  { %v280_v43 = vpop.f32.mrf.mxu2  ;;  %v357_v1 = vsel %vm347_vm2, %v344_v56, 0.0 }
 0x16e   :  { %v281_v45 = vadd.f32 %v280_v43, %v219_v34 }
 0x170   :  { %v475_v49 = vpop.eup %474  ;;  %478 = vtanh.f32 %v281_v45 }
 0x171   :  { %v342_v52 = vmul.f32 %v475_v49, %v317_v38  ;;  %v477_v53 = vpop.eup %476 }
 0x172   :  { %v345_v61 = vmul.f32 %v477_v53, %v332_v58 }
 0x173   :  { %v353_v57 = vsel %vm347_vm2, %v342_v52, 0.0 }
 0x174   :  { %v354_v59 = vadd.f32 %v353_v57, %v352_v55  ;;  %v359_v4 = vsel %vm347_vm2, %v345_v61, 0.0 }
 0x176   :  { %v479_v62 = vpop.eup %478  ;;  %v356_v0 = vadd.f32 %v355_v60, %v354_v59 }
 0x177   :  { %v346_v2 = vmul.f32 %v479_v62, %v337_v63 }
 0x178   :  { %v358_v3 = vadd.f32 %v357_v1, %v356_v0 }
 0x179   :  { %v361_v6 = vsel %vm347_vm2, %v346_v2, 0.0 }
 0x17a   :  { %v360_v5 = vadd.f32 %v359_v4, %v358_v3 }
 0x17c   :  { %v362_v7 = vadd.f32 %v361_v6, %v360_v5 }
 0x17e   :  { %v363_v8 = vrot.slane %v362_v7, 4 }
 0x180   :  { %v364_v9 = vadd.f32 %v363_v8, %v362_v7 }
 0x182   :  { %v365_v10 = vrot.slane %v364_v9, 2 }
 0x184   :  { %v366_v11 = vadd.f32 %v365_v10, %v364_v9 }
 0x186   :  { %v367_v12 = vrot.slane %v366_v11, 1 }
 0x188   :  { %v368_v14 = vadd.f32 %v367_v12, %v366_v11 }
 0x18a   :  { %v371_v15 = vadd.f32 %v370_v13, %v368_v14 }
 0x18c   :  { %373 = vst.msk [vmem:[#allocation3] sm:$0x1] %vm372_vm3, %v371_v15 }
 0x18d   :  { %384 = dma.vmem_to_hbm [thread:$0]  %s380_s17, 16, %s382_s20, [#allocation4]  }
 0x18e   :  { %504 = dma.done.wait [#allocation4], 16  }
 0x18f   :  { %505 = vsyncadd [#allocation4], 4294967280 }
 0x190   :  { %389 = vsyncpa [#allocation4], 1 }

</bundles_post_ra>
